<compile_context>
chip_gen: v7x
topology: tpu7x:2x2x1
jax: 0.10.0
libtpu: 0.0.40
codegen_flags: <defaults>
</compile_context>

<pallas_src>
import math

import jax
import jax.numpy as jnp
from jax.experimental import pallas as pl
from jax.experimental.pallas import tpu as pltpu


# ---------------------------------------------------------------------------
# Kernels
# ---------------------------------------------------------------------------

def _noisy_linear_train_kernel(x_ref, wmu_ref, wsig_ref, ein_ref, eout_ref,
                               beff_ref, o_ref):
    k = pl.program_id(2)

    @pl.when(k == 0)
    def _():
        # Seed the VMEM-resident f32 output tile with the precomputed bias row.
        o_ref[...] = jnp.broadcast_to(beff_ref[...], o_ref.shape)

    # Factorized noise: eps block [tk, tn] = eps_in[tk, 1] * eps_out[1, tn]
    # built on the VPU in the streamed dtype (bf16 on v6e/v7x); the full
    # [Out, In] epsilon matrix is never materialized in HBM.
    w = wmu_ref[...] + wsig_ref[...] * (ein_ref[...] * eout_ref[...])

    o_ref[...] += jax.lax.dot_general(
        x_ref[...], w,
        dimension_numbers=(((1,), (0,)), ((), ())),
        preferred_element_type=jnp.float32,
    )


def _noisy_linear_eval_kernel(x_ref, wmu_ref, bmu_ref, o_ref):
    k = pl.program_id(2)

    @pl.when(k == 0)
    def _():
        o_ref[...] = jnp.broadcast_to(bmu_ref[...], o_ref.shape)

    o_ref[...] += jax.lax.dot_general(
        x_ref[...], wmu_ref[...],
        dimension_numbers=(((1,), (0,)), ((), ())),
        preferred_element_type=jnp.float32,
    )


# ---------------------------------------------------------------------------
# Tiling helpers
# ---------------------------------------------------------------------------

def _round_up(x, m):
    return (x + m - 1) // m * m


def _pick_tile(padded_dim, *, prefer_multi_block):
    """Largest multiple of 128 that divides `padded_dim`, is <= 512, and (if
    requested and possible) leaves >= 2 blocks along this axis (v7x: keep
    both TensorCores busy on the parallel grid axes)."""
    n = padded_dim // 128
    best = 1
    for m in range(1, n + 1):
        if n % m or m * 128 > 512:
            continue
        if prefer_multi_block and n > 1 and n // m < 2:
            continue
        best = m
    return best * 128


# ---------------------------------------------------------------------------
# One-time parameter preparation (padding + dtype cast happen here, NOT per call)
# ---------------------------------------------------------------------------

def prepare_noisy_linear(params, *, mxu_dtype=jnp.bfloat16):
    """Pad + cast the static parameters once.

    mxu_dtype=bfloat16 (default, best on v6e/v7x) streams weights and x at
    half the HBM bytes; f32 accumulation is kept in-kernel. Use
    mxu_dtype=float32 for exact f32 math (or on v5e if the bf16 elementwise
    build is undesirable).

    If noise is resampled per training step, only eps_in / eps_out / bias_eff
    (three small vectors) need refreshing -- the weight padding/cast stays.
    """
    In, Out = params["weight_mu_t"].shape
    Inp = _round_up(In, 128)
    Outp = _round_up(Out, 128)
    tk = _pick_tile(Inp, prefer_multi_block=False)
    tn = _pick_tile(Outp, prefer_multi_block=True)

    def pad2(a, r, c):
        pr, pc = r - a.shape[0], c - a.shape[1]
        if pr == 0 and pc == 0:
            return a
        return jnp.pad(a, ((0, pr), (0, pc)))

    b_eff = params["bias_mu"] + params["bias_sigma"] * params["bias_epsilon"]

    return {
        "In": In, "Out": Out, "Inp": Inp, "Outp": Outp, "tk": tk, "tn": tn,
        "mxu_dtype": mxu_dtype,
        # big operands: stored padded & cast to the streaming dtype
        "weight_mu_t": pad2(params["weight_mu_t"], Inp, Outp).astype(mxu_dtype),
        "weight_sigma_t": pad2(params["weight_sigma_t"], Inp, Outp).astype(mxu_dtype),
        # factorized noise (vectors, cheap to refresh per resample)
        "eps_in": pad2(params["eps_in"], Inp, 1).astype(mxu_dtype),
        "eps_out": pad2(params["eps_out"], 1, Outp).astype(mxu_dtype),
        # biases stay f32 (seed the f32 accumulator exactly)
        "bias_eff": pad2(b_eff, 1, Outp).astype(jnp.float32),
        "bias_mu": pad2(params["bias_mu"], 1, Outp).astype(jnp.float32),
    }


# ---------------------------------------------------------------------------
# Forward wrapper
# ---------------------------------------------------------------------------

def noisy_linear(x, prepared, *, training: bool = True):
    """x: [B, in_features] f32 -> [B, out_features] f32."""
    B, In = x.shape
    assert In == prepared["In"]
    Out = prepared["Out"]
    Inp, Outp = prepared["Inp"], prepared["Outp"]
    tk, tn = prepared["tk"], prepared["tn"]
    mxu_dtype = prepared["mxu_dtype"]

    # Batch tiling: big tm (less weight re-streaming), rounded to the native
    # sublane packing of the streamed dtype.
    sub = 8 if mxu_dtype == jnp.float32 else 16
    tm = min(512, _round_up(B, sub))
    Bp = _round_up(B, tm)

    # v7x: if the whole parallel (batch x out) grid is a single block, split
    # the batch axis so both TensorCores get work (weights are small / cheap
    # to re-stream in this regime).
    if (Bp // tm) * (Outp // tn) < 2 and B > sub:
        tm_split = _round_up(-(-B // 2), sub)
        Bp_split = _round_up(B, tm_split)
        if Bp_split // tm_split >= 2:
            tm, Bp = tm_split, Bp_split

    # Only x is padded per call (activations are small); weights were padded
    # once at prepare time.
    xp = x
    if (Bp, Inp) != (B, In):
        xp = jnp.pad(x, ((0, Bp - B), (0, Inp - In)))
    xp = xp.astype(mxu_dtype)

    grid = (Bp // tm, Outp // tn, Inp // tk)

    x_spec = pl.BlockSpec((tm, tk), lambda i, j, k: (i, k))
    w_spec = pl.BlockSpec((tk, tn), lambda i, j, k: (k, j))
    ein_spec = pl.BlockSpec((tk, 1), lambda i, j, k: (k, 0))
    row_spec = pl.BlockSpec((1, tn), lambda i, j, k: (0, j))
    out_spec = pl.BlockSpec((tm, tn), lambda i, j, k: (i, j))

    out_shape = jax.ShapeDtypeStruct((Bp, Outp), jnp.float32)
    compiler_params = pltpu.CompilerParams(
        dimension_semantics=("parallel", "parallel", "arbitrary"))

    if training:
        yp = pl.pallas_call(
            _noisy_linear_train_kernel,
            out_shape=out_shape,
            grid_spec=pltpu.PrefetchScalarGridSpec(
                num_scalar_prefetch=0,
                grid=grid,
                in_specs=[x_spec, w_spec, w_spec, ein_spec, row_spec, row_spec],
                out_specs=out_spec),
            compiler_params=compiler_params,
        )(
            xp,
            prepared["weight_mu_t"],
            prepared["weight_sigma_t"],
            prepared["eps_in"],
            prepared["eps_out"],
            prepared["bias_eff"],
        )
    else:
        # Eval path declares ONLY the mu tensors -> no DMA of sigma / epsilon.
        yp = pl.pallas_call(
            _noisy_linear_eval_kernel,
            out_shape=out_shape,
            grid_spec=pltpu.PrefetchScalarGridSpec(
                num_scalar_prefetch=0,
                grid=grid,
                in_specs=[x_spec, w_spec, row_spec],
                out_specs=out_spec),
            compiler_params=compiler_params,
        )(
            xp,
            prepared["weight_mu_t"],
            prepared["bias_mu"],
        )

    return yp[:B, :Out]


# ---------------------------------------------------------------------------
# Parameter / noise init (mirrors NoisyLinear.reset_parameters + sample_noise)
# ---------------------------------------------------------------------------

def _scale_noise(key, size):
    # f(x) = sign(x) * sqrt(|x|)   (factorized Gaussian noise)
    x = jax.random.normal(key, (size,), dtype=jnp.float32)
    return jnp.sign(x) * jnp.sqrt(jnp.abs(x))


def init_noisy_linear(key, in_features, out_features, std_init=0.5):
    """JAX re-implementation of NoisyLinear's parameter setup.

    Weights are stored transposed as [In, Out] (kernel-friendly layout); the
    noise is kept factorized as eps_in [In, 1] and eps_out [1, Out]
    (weight_epsilon = outer(eps_out, eps_in) is never materialized).
    """
    k_wmu, k_bmu, k_ein, k_eout = jax.random.split(key, 4)
    mu_range = 1.0 / math.sqrt(in_features)

    weight_mu = jax.random.uniform(
        k_wmu, (out_features, in_features), jnp.float32, -mu_range, mu_range).T
    weight_sigma = jnp.full((in_features, out_features),
                            std_init / math.sqrt(in_features), jnp.float32)
    bias_mu = jax.random.uniform(
        k_bmu, (out_features,), jnp.float32, -mu_range, mu_range)
    bias_sigma = jnp.full((out_features,),
                          std_init / math.sqrt(out_features), jnp.float32)

    eps_in = _scale_noise(k_ein, in_features)
    eps_out = _scale_noise(k_eout, out_features)

    return {
        "weight_mu_t": weight_mu,            # [In, Out]
        "weight_sigma_t": weight_sigma,      # [In, Out]
        "eps_in": eps_in[:, None],           # [In, 1]
        "eps_out": eps_out[None, :],         # [1, Out]
        "bias_mu": bias_mu[None, :],         # [1, Out]
        "bias_sigma": bias_sigma[None, :],   # [1, Out]
        "bias_epsilon": eps_out[None, :],    # [1, Out]
    }


# ---------------------------------------------------------------------------
# Self-test
# ---------------------------------------------------------------------------

if __name__ == "__main__":
    key = jax.random.PRNGKey(0)
    k_p1, k_x1, k_p2, k_x2 = jax.random.split(key, 4)

    def reference(x, raw, training):
        hp = jax.lax.Precision.HIGHEST
        if training:
            w_eff_t = raw["weight_mu_t"] + raw["weight_sigma_t"] * (
                raw["eps_in"] * raw["eps_out"])
            b_eff = raw["bias_mu"] + raw["bias_sigma"] * raw["bias_epsilon"]
            return jnp.dot(x, w_eff_t, precision=hp) + b_eff
        return jnp.dot(x, raw["weight_mu_t"], precision=hp) + raw["bias_mu"]

    # --- case 1: small shapes, both bf16 (default) and f32 streaming -------
    B, IN, OUT = 8, 32, 64
    raw1 = init_noisy_linear(k_p1, IN, OUT, std_init=0.5)
    prep_bf16 = prepare_noisy_linear(raw1, mxu_dtype=jnp.bfloat16)
    prep_f32 = prepare_noisy_linear(raw1, mxu_dtype=jnp.float32)
    x1 = jax.random.normal(k_x1, (B, IN), dtype=jnp.float32)

    y_tr_bf16 = noisy_linear(x1, prep_bf16, training=True)
    y_ev_bf16 = noisy_linear(x1, prep_bf16, training=False)
    y_tr_f32 = noisy_linear(x1, prep_f32, training=True)
    y_ev_f32 = noisy_linear(x1, prep_f32, training=False)

    # --- case 2: unaligned shapes + batch-split path, f32 -------------------
    B2, IN2, OUT2 = 20, 200, 72
    raw2 = init_noisy_linear(k_p2, IN2, OUT2, std_init=0.5)
    prep2 = prepare_noisy_linear(raw2, mxu_dtype=jnp.float32)
    x2 = jax.random.normal(k_x2, (B2, IN2), dtype=jnp.float32)
    y2_tr = noisy_linear(x2, prep2, training=True)
    y2_ev = noisy_linear(x2, prep2, training=False)

    jax.block_until_ready((y_tr_bf16, y_ev_bf16, y_tr_f32, y_ev_f32, y2_tr, y2_ev))

    # References + checks
    assert y_tr_bf16.shape == (B, OUT) and y_ev_bf16.shape == (B, OUT)
    assert y2_tr.shape == (B2, OUT2)

    assert jnp.allclose(y_tr_f32, reference(x1, raw1, True), atol=1e-5, rtol=1e-5)
    assert jnp.allclose(y_ev_f32, reference(x1, raw1, False), atol=1e-5, rtol=1e-5)
    assert jnp.allclose(y_tr_bf16, reference(x1, raw1, True), atol=5e-2, rtol=5e-2)
    assert jnp.allclose(y_ev_bf16, reference(x1, raw1, False), atol=5e-2, rtol=5e-2)
    assert jnp.allclose(y2_tr, reference(x2, raw2, True), atol=1e-4, rtol=1e-4)
    assert jnp.allclose(y2_ev, reference(x2, raw2, False), atol=1e-4, rtol=1e-4)

    print("KERNEL_OK")
</pallas_src>

<mosaic_0001>
module attributes {stable_mosaic.version = 11 : i64} {
  func.func @_noisy_linear_train_kernel(%arg0: i32, %arg1: i32, %arg2: i32, %arg3: memref<16x128xbf16, #tpu.memory_space<vmem>>, %arg4: memref<128x128xbf16, #tpu.memory_space<vmem>>, %arg5: memref<128x128xbf16, #tpu.memory_space<vmem>>, %arg6: memref<128x1xbf16, #tpu.memory_space<vmem>>, %arg7: memref<1x128xbf16, #tpu.memory_space<vmem>>, %arg8: memref<1x128xf32, #tpu.memory_space<vmem>>, %arg9: memref<16x128xf32, #tpu.memory_space<vmem>>) attributes {dimension_semantics = [#tpu.dimension_semantics<parallel>, #tpu.dimension_semantics<parallel>, #tpu.dimension_semantics<arbitrary>], iteration_bounds = array<i64: 1, 1, 1>, scalar_prefetch = 0 : i64, scratch_operands = 0 : i64, tpu.core_type = #tpu.core_type<tc>, window_params = [{transform_indices = @transform_0, window_bounds = array<i64: 16, 128>}, {transform_indices = @transform_1, window_bounds = array<i64: 128, 128>}, {transform_indices = @transform_2, window_bounds = array<i64: 128, 128>}, {transform_indices = @transform_3, window_bounds = array<i64: 128, 1>}, {transform_indices = @transform_4, window_bounds = array<i64: 1, 128>}, {transform_indices = @transform_5, window_bounds = array<i64: 1, 128>}, {transform_indices = @transform_6, window_bounds = array<i64: 16, 128>}]} {
    %c0_i32 = arith.constant 0 : i32
    %0 = arith.cmpi eq, %arg2, %c0_i32 : i32
    %1 = arith.extui %0 : i1 to i32
    %c0_i32_0 = arith.constant 0 : i32
    %2 = arith.cmpi ne, %1, %c0_i32_0 : i32
    scf.if %2 {
      %c0_14 = arith.constant 0 : index
      %c0_15 = arith.constant 0 : index
      %17 = vector.load %arg8[%c0_14, %c0_15] : memref<1x128xf32, #tpu.memory_space<vmem>>, vector<1x128xf32>
      %18 = vector.shape_cast %17 : vector<1x128xf32> to vector<1x128xf32>
      %19 = vector.broadcast %18 : vector<1x128xf32> to vector<16x128xf32>
      %c0_16 = arith.constant 0 : index
      %c0_17 = arith.constant 0 : index
      %20 = vector.load %arg9[%c0_16, %c0_17] : memref<16x128xf32, #tpu.memory_space<vmem>>, vector<16x128xf32>
      tpu.vector_store %arg9[%c0_16, %c0_17], %19 {strides = array<i32>} : memref<16x128xf32, #tpu.memory_space<vmem>>, vector<16x128xf32>,
    } else {
    }
    %c0 = arith.constant 0 : index
    %c0_1 = arith.constant 0 : index
    %3 = vector.load %arg4[%c0, %c0_1] : memref<128x128xbf16, #tpu.memory_space<vmem>>, vector<128x128xbf16>
    %c0_2 = arith.constant 0 : index
    %c0_3 = arith.constant 0 : index
    %4 = vector.load %arg5[%c0_2, %c0_3] : memref<128x128xbf16, #tpu.memory_space<vmem>>, vector<128x128xbf16>
    %c0_4 = arith.constant 0 : index
    %c0_5 = arith.constant 0 : index
    %5 = vector.load %arg6[%c0_4, %c0_5] : memref<128x1xbf16, #tpu.memory_space<vmem>>, vector<128x1xbf16>
    %c0_6 = arith.constant 0 : index
    %c0_7 = arith.constant 0 : index
    %6 = vector.load %arg7[%c0_6, %c0_7] : memref<1x128xbf16, #tpu.memory_space<vmem>>, vector<1x128xbf16>
    %7 = vector.broadcast %5 : vector<128x1xbf16> to vector<128x128xbf16>
    %8 = vector.broadcast %6 : vector<1x128xbf16> to vector<128x128xbf16>
    %9 = arith.mulf %7, %8 : vector<128x128xbf16>
    %10 = arith.mulf %4, %9 : vector<128x128xbf16>
    %11 = arith.addf %3, %10 : vector<128x128xbf16>
    %c0_8 = arith.constant 0 : index
    %c0_9 = arith.constant 0 : index
    %12 = vector.load %arg9[%c0_8, %c0_9] : memref<16x128xf32, #tpu.memory_space<vmem>>, vector<16x128xf32>
    %c0_10 = arith.constant 0 : index
    %c0_11 = arith.constant 0 : index
    %13 = vector.load %arg3[%c0_10, %c0_11] : memref<16x128xbf16, #tpu.memory_space<vmem>>, vector<16x128xbf16>
    %cst = arith.constant dense<0.000000e+00> : vector<16x128xf32>
    %14 = tpu.matmul %13, %11, %cst {dimension_numbers = #tpu.dot_dimension_numbers<[1], [0], [0], [1], [0, 0, 1, 1], [], []>} : vector<16x128xbf16>, vector<128x128xbf16>, vector<16x128xf32> -> vector<16x128xf32>
    %15 = arith.addf %12, %14 : vector<16x128xf32>
    %c0_12 = arith.constant 0 : index
    %c0_13 = arith.constant 0 : index
    %16 = vector.load %arg9[%c0_12, %c0_13] : memref<16x128xf32, #tpu.memory_space<vmem>>, vector<16x128xf32>
    tpu.vector_store %arg9[%c0_12, %c0_13], %15 {strides = array<i32>} : memref<16x128xf32, #tpu.memory_space<vmem>>, vector<16x128xf32>,
    return
  }
  func.func @transform_0(%arg0: i32, %arg1: i32, %arg2: i32) -> (i32, i32) {
    %c0_i32 = arith.constant 0 : i32
    return %arg0, %arg2 : i32, i32
  }
  func.func @transform_1(%arg0: i32, %arg1: i32, %arg2: i32) -> (i32, i32) {
    %c0_i32 = arith.constant 0 : i32
    return %arg2, %arg1 : i32, i32
  }
  func.func @transform_2(%arg0: i32, %arg1: i32, %arg2: i32) -> (i32, i32) {
    %c0_i32 = arith.constant 0 : i32
    return %arg2, %arg1 : i32, i32
  }
  func.func @transform_3(%arg0: i32, %arg1: i32, %arg2: i32) -> (i32, i32) {
    %c0_i32 = arith.constant 0 : i32
    %c0_i32_0 = arith.constant 0 : i32
    return %arg2, %c0_i32 : i32, i32
  }
  func.func @transform_4(%arg0: i32, %arg1: i32, %arg2: i32) -> (i32, i32) {
    %c0_i32 = arith.constant 0 : i32
    %c0_i32_0 = arith.constant 0 : i32
    return %c0_i32, %arg1 : i32, i32
  }
  func.func @transform_5(%arg0: i32, %arg1: i32, %arg2: i32) -> (i32, i32) {
    %c0_i32 = arith.constant 0 : i32
    %c0_i32_0 = arith.constant 0 : i32
    return %c0_i32, %arg1 : i32, i32
  }
  func.func @transform_6(%arg0: i32, %arg1: i32, %arg2: i32) -> (i32, i32) {
    %c0_i32 = arith.constant 0 : i32
    return %arg0, %arg1 : i32, i32
  }
}

</mosaic_0001>

<bundles_post_ra>
// kernel: tpu_custom_call.1
= control target key start
LH: loop header
LB: loop body
LE: loop exit
PB: predicated region body
PF: predicated region fallthrough
CT: control target
= control target key end

     0   :  { %11 = vsyncpa [#allocation3], 0  ;;  %s842_s0 = inlined_call_operand.hbm [shape: bf16[16,128], index: 0, kind: input, shape index: {}]   ;;  %s843_s1 = inlined_call_operand.vmem [shape: bf16[128,128], index: 1, kind: input, shape index: {}]   ;;  %s844_s2 = inlined_call_operand.hbm [shape: bf16[128,128], index: 2, kind: input, shape index: {}]   ;;  %s845_s3 = inlined_call_operand.vmem [shape: bf16[128,1], index: 3, kind: input, shape index: {}]   ;;  %s846_s4 = inlined_call_operand.vmem [shape: bf16[1,128], index: 4, kind: input, shape index: {}]   ;;  %s847_s5 = inlined_call_operand.vmem [shape: f32[1,128], index: 5, kind: input, shape index: {}]   ;;  %s848_s6 = inlined_call_operand.hbm [shape: f32[16,128], index: 6, kind: output, shape index: {}]  }
   0x1   :  { %12 = vsyncpa [#allocation6], 0 }
   0x2   :  { %13 = vsyncpa [#allocation4], 0  ;;  %s613_s21 = smov [#allocation2]   ;;  %s541_s25 = scalar_lea.hbm %s842_s0, 128 }
   0x3   :  { %s19_s22 = sshll.u32 %s613_s21, 4  ;;  %p542_p0 = scmp.ne.s32.totalorder %s842_s0, %s541_s25  ;;  %s20_s22 = int_to_ptr.vmem [resolvable:$true] %s19_s22 }
   0x4   :  { %p545_p1 = scmp.lt.u32.totalorder %s541_s25, %s842_s0 }
   0x6   :  { %p547_p2 = pnand %p545_p1, %p542_p0 }
   0x8   :  { %550 = shalt.err (!%p547_p2)
}
   0x9   :  { %s551_s30 = scalar_lea.vmem %s20_s22, 128  ;;  %p556_p4 = scmp.lt.s32.totalorder %s20_s22, %s20_s22 }
   0xa   :  { %p552_p3 = scmp.ne.s32.totalorder %s20_s22, %s551_s30  ;;  %p557_p5 = scmp.lt.s32.totalorder %s551_s30, %s551_s30 }
   0xc   :  { %p558_p6 = por %p557_p5, %p556_p4 }
   0xe   :  { %p559_p7 = pnand %p558_p6, %p552_p3 }
  0x10   :  { %562 = shalt.err (!%p559_p7)
}
  0x11   :  { %s614_s7 = smov 64   ;;  %s615_s8 = smov 4  }
  0x12   :  { %25 = dma.hbm_to_vmem [thread:$0]  %s842_s0, 128, %s20_s22, [#allocation3], %s614_s7, %s614_s7, %s615_s8  }
  0x13   :  { %s616_s11 = smov [#allocation5]   ;;  %s563_s15 = scalar_lea.hbm %s844_s2, 1024 }
  0x14   :  { %s33_s12 = sshll.u32 %s616_s11, 4  ;;  %p564_p8 = scmp.ne.s32.totalorder %s844_s2, %s563_s15  ;;  %s34_s12 = int_to_ptr.vmem [resolvable:$true] %s33_s12 }
  0x15   :  { %p567_p9 = scmp.lt.u32.totalorder %s563_s15, %s844_s2 }
  0x17   :  { %p569_p10 = pnand %p567_p9, %p564_p8 }
  0x19   :  { %572 = shalt.err (!%p569_p10)
}
  0x1a   :  { %s573_s20 = scalar_lea.vmem %s34_s12, 1024  ;;  %p578_p12 = scmp.lt.s32.totalorder %s34_s12, %s34_s12 }
  0x1b   :  { %p574_p11 = scmp.ne.s32.totalorder %s34_s12, %s573_s20  ;;  %p579_p13 = scmp.lt.s32.totalorder %s573_s20, %s573_s20 }
  0x1d   :  { %p580_p0 = por %p579_p13, %p578_p12 }
  0x1f   :  { %p581_p1 = pnand %p580_p0, %p574_p11 }
  0x21   :  { %584 = shalt.err (!%p581_p1)
}
  0x22   :  { %39 = dma.hbm_to_vmem [thread:$0]  %s844_s2, 1024, %s34_s12, [#allocation6], %s614_s7, %s614_s7, %s615_s8  }
  0x23   :  { %607 = dma.done.wait [#allocation3], 128  }
  0x24   :  { %608 = vsyncadd [#allocation3], 4294967168 }
  0x25   :  { %609 = dma.done.wait [#allocation6], 1024  }
  0x26   :  { %610 = vsyncadd [#allocation6], 4294966272  ;;  %v617_v0 = vmov 0   ;;  %v100_v1 = vld [vmem:[%s845_s3 + $0x8] sm:$0xf]  ;;  %v618_v11 = vmov 0.0   ;;  %v123_v18 = vlaneseq }
  0x27   :  { %539 = vset.pattern.permute.xlu1 %v617_v0  ;;  %538 = vset.pattern.permute.xlu0 %v617_v0  ;;  %v98_v2 = vld [vmem:[%s845_s3] sm:$0xf]  ;;  %v101_v3 = vld [vmem:[%s845_s3 + $0xc] sm:$0xf]  ;;  %v99_v4 = vld [vmem:[%s845_s3 + $0x4] sm:$0xf] }
  0x28   :  { %141 = vperm.xlu1 %539, %v100_v1   ;;  %117 = vperm.xlu0 %538, %v98_v2   ;;  %v103_v5 = vld [vmem:[%s845_s3 + $0x14] sm:$0xf]  ;;  %v102_v6 = vld [vmem:[%s845_s3 + $0x10] sm:$0xf]  ;;  %v105_v7 = vld [vmem:[%s845_s3 + $0x1c] sm:$0xf] }
  0x29   :  { %v104_v8 = vld [vmem:[%s845_s3 + $0x18] sm:$0xf]  ;;  %v107_v9 = vld [vmem:[%s845_s3 + $0x24] sm:$0xf]  ;;  %v106_v10 = vld [vmem:[%s845_s3 + $0x20] sm:$0xf]  ;;  %507 = vmatprep.subr.bf16.mxu0 %v618_v11 }
  0x2a   :  { %v109_v12 = vld [vmem:[%s845_s3 + $0x2c] sm:$0xf]  ;;  %v108_v13 = vld [vmem:[%s845_s3 + $0x28] sm:$0xf]  ;;  %v111_v14 = vld [vmem:[%s845_s3 + $0x34] sm:$0xf] }
  0x2b   :  { %v110_v15 = vld [vmem:[%s845_s3 + $0x30] sm:$0xf]  ;;  %v113_v16 = vld [vmem:[%s845_s3 + $0x3c] sm:$0xf]  ;;  %v112_v17 = vld [vmem:[%s845_s3 + $0x38] sm:$0xf] }
  0x2c   :  { %153 = vperm.xlu1 %539, %v101_v3   ;;  %129 = vperm.xlu0 %538, %v99_v4   ;;  %vm619_vm0 = vmmov 0   ;;  %v124_v19 = vshrl.u32 %v123_v18, 7  ;;  %v114_v20 = vld [vmem:[%s846_s4] sm:$0x1]  ;;  %v620_v21 = vmov 839922192  }
  0x2d   :  { %523 = vmatprep.mubr.msk.bf16.mxu0 %vm619_vm0, %v618_v11  ;;  %v121_v22 = vunpack.c.l.s4 %v620_v21  ;;  %v308_v23 = vpack.i.b16 %v114_v20, %v114_v20  ;;  %v82_v36 = vld [vmem:[#allocation5] sm:$0xf]  ;;  %v83_v40 = vld [vmem:[#allocation5 + $0x4] sm:$0xf]  ;;  %v84_v41 = vld [vmem:[#allocation5 + $0x8] sm:$0xf] }
  0x2e   :  { %v312_v24 = vsub.s32 0, %v124_v19  ;;  %v85_v42 = vld [vmem:[#allocation5 + $0xc] sm:$0xf]  ;;  %v67_v48 = vld [vmem:[%s843_s1 + $0x4] sm:$0xf]  ;;  %s621_s9 = smov [#allocation7]  }
  0x2f   :  { %v122_v25 = vunpack.c.0.s8 %v121_v22  ;;  %v66_v52 = vld [vmem:[%s843_s1] sm:$0xf]  ;;  %v87_v55 = vld [vmem:[#allocation5 + $0x14] sm:$0xf]  ;;  %v86_v56 = vld [vmem:[#allocation5 + $0x10] sm:$0xf] }
  0x30   :  { %177 = vperm.xlu1 %539, %v103_v5   ;;  %165 = vperm.xlu0 %538, %v102_v6   ;;  %v313_v26 = vrot.slane %v308_v23, %v312_v24  ;;  %v68_v60 = vld [vmem:[%s843_s1 + $0x8] sm:$0xf]  ;;  %v69_v61 = vld [vmem:[%s843_s1 + $0xc] sm:$0xf]  ;;  %s474_s10 = sshll.u32 %s621_s9, 4  ;;  %s475_s10 = int_to_ptr.vmem [resolvable:$true] %s474_s10 }
  0x31   :  { %v736_v27 = vsub.s32 %v122_v25, %v124_v19  ;;  %v91_v23 = vld [vmem:[#allocation5 + $0x24] sm:$0xf]  ;;  %p590_p3 = scmp.lt.s32.totalorder %s475_s10, %s475_s10 }
  0x32   :  { %v738_v28 = vcombine.low %v313_v26, %v313_v26  ;;  %v90_v26 = vld [vmem:[#allocation5 + $0x20] sm:$0xf] }
  0x34   :  { %201 = vperm.xlu1 %539, %v105_v7   ;;  %189 = vperm.xlu0 %538, %v104_v8   ;;  %v70_v8 = vld [vmem:[%s843_s1 + $0x10] sm:$0xf] }
  0x38   :  { %225 = vperm.xlu1 %539, %v107_v9   ;;  %213 = vperm.xlu0 %538, %v106_v10   ;;  %v71_v9 = vld [vmem:[%s843_s1 + $0x14] sm:$0xf]  ;;  %v89_v10 = vld [vmem:[#allocation5 + $0x1c] sm:$0xf] }
  0x3c   :  { %249 = vperm.xlu1 %539, %v109_v12   ;;  %237 = vperm.xlu0 %538, %v108_v13   ;;  %v88_v13 = vld [vmem:[#allocation5 + $0x18] sm:$0xf] }
  0x40   :  { %273 = vperm.xlu1 %539, %v111_v14   ;;  %261 = vperm.xlu0 %538, %v110_v15  }
  0x44   :  { %297 = vperm.xlu1 %539, %v113_v16   ;;  %285 = vperm.xlu0 %538, %v112_v17  }
  0xa7   :  { %v142_v29 = vpop.permute.xlu1 %141  ;;  %v118_v30 = vpop.permute.xlu0 %117 }
  0xa8   :  { %v126_v31 = vrot.slane %v118_v30, %v736_v27  ;;  %v150_v32 = vrot.slane %v142_v29, %v736_v27  ;;  %v72_v30 = vld [vmem:[%s843_s1 + $0x18] sm:$0xf] }
  0xaa   :  { %v318_v33 = vmul.bf16 %v738_v28, %v126_v31  ;;  %v320_v39 = vmul.bf16 %v738_v28, %v150_v32  ;;  %v73_v31 = vld [vmem:[%s843_s1 + $0x1c] sm:$0xf] }
  0xab   :  { %v154_v34 = vpop.permute.xlu1 %153  ;;  %v130_v35 = vpop.permute.xlu0 %129 }
  0xac   :  { %v162_v37 = vrot.slane %v154_v34, %v736_v27  ;;  %v138_v38 = vrot.slane %v130_v35, %v736_v27  ;;  %v334_v45 = vmul.bf16 %v318_v33, %v82_v36  ;;  %v336_v53 = vmul.bf16 %v320_v39, %v84_v41  ;;  %v93_v39 = vld [vmem:[#allocation5 + $0x2c] sm:$0xf] }
  0xae   :  { %v321_v43 = vmul.bf16 %v738_v28, %v162_v37  ;;  %v319_v44 = vmul.bf16 %v738_v28, %v138_v38  ;;  %v350_v0 = vadd.bf16 %v334_v45, %v66_v52  ;;  %v352_v6 = vadd.bf16 %v336_v53, %v68_v60  ;;  %v74_v45 = vld [vmem:[%s843_s1 + $0x20] sm:$0xf]  ;;  %v94_v60 = vld [vmem:[#allocation5 + $0x30] sm:$0xf] }
  0xaf   :  { %v178_v46 = vpop.permute.xlu1 %177  ;;  %v166_v47 = vpop.permute.xlu0 %165 }
  0xb0   :  { %v335_v49 = vmul.bf16 %v319_v44, %v83_v40  ;;  %v186_v50 = vrot.slane %v178_v46, %v736_v27  ;;  %v174_v51 = vrot.slane %v166_v47, %v736_v27  ;;  %v337_v54 = vmul.bf16 %v321_v43, %v85_v42  ;;  %v92_v40 = vld [vmem:[#allocation5 + $0x28] sm:$0xf]  ;;  %v75_v46 = vld [vmem:[%s843_s1 + $0x24] sm:$0xf] }
  0xb2   :  { %v323_v57 = vmul.bf16 %v738_v28, %v186_v50  ;;  %v322_v58 = vmul.bf16 %v738_v28, %v174_v51  ;;  %v351_v59 = vadd.bf16 %v335_v49, %v67_v48  ;;  %v353_v7 = vadd.bf16 %v337_v54, %v69_v61 }
  0xb3   :  { %v202_v62 = vpop.permute.xlu1 %201  ;;  %v190_v63 = vpop.permute.xlu0 %189 }
  0xb4   :  { %v339_v1 = vmul.bf16 %v323_v57, %v87_v55  ;;  %v338_v2 = vmul.bf16 %v322_v58, %v86_v56  ;;  %v210_v3 = vrot.slane %v202_v62, %v736_v27  ;;  %v198_v4 = vrot.slane %v190_v63, %v736_v27  ;;  %v76_v56 = vld [vmem:[%s843_s1 + $0x28] sm:$0xf]  ;;  %v77_v57 = vld [vmem:[%s843_s1 + $0x2c] sm:$0xf]  ;;  %v95_v58 = vld [vmem:[#allocation5 + $0x34] sm:$0xf] }
  0xb5   :  { %v490_v5 = vcombine.low %v350_v0, %v351_v59  ;;  %v491_v24 = vcombine.low %v352_v6, %v353_v7  ;;  %v97_v6 = vld [vmem:[#allocation5 + $0x3c] sm:$0xf] }
  0xb6   :  { %v325_v12 = vmul.bf16 %v738_v28, %v210_v3  ;;  %v324_v14 = vmul.bf16 %v738_v28, %v198_v4  ;;  %v354_v19 = vadd.bf16 %v338_v2, %v70_v8  ;;  %v355_v20 = vadd.bf16 %v339_v1, %v71_v9  ;;  %v96_v9 = vld [vmem:[#allocation5 + $0x38] sm:$0xf] }
  0xb7   :  { %508 = vmatpush3.bf16.msra.mxu0 %v490_v5  ;;  %v226_v15 = vpop.permute.xlu1 %225  ;;  %v214_v16 = vpop.permute.xlu0 %213 }
  0xb8   :  { %v234_v17 = vrot.slane %v226_v15, %v736_v27  ;;  %v222_v18 = vrot.slane %v214_v16, %v736_v27  ;;  %509 = vmatprep.subr.bf16.mxu0 %v618_v11  ;;  %v341_v21 = vmul.bf16 %v325_v12, %v89_v10  ;;  %v340_v22 = vmul.bf16 %v324_v14, %v88_v13  ;;  %v78_v12 = vld [vmem:[%s843_s1 + $0x30] sm:$0xf] }
  0xb9   :  { %v492_v36 = vcombine.low %v354_v19, %v355_v20 }
  0xba   :  { %v327_v25 = vmul.bf16 %v738_v28, %v234_v17  ;;  %v326_v29 = vmul.bf16 %v738_v28, %v222_v18  ;;  %v356_v41 = vadd.bf16 %v340_v22, %v72_v30  ;;  %v357_v42 = vadd.bf16 %v341_v21, %v73_v31  ;;  %v81_v18 = vld [vmem:[%s843_s1 + $0x3c] sm:$0xf] }
  0xbb   :  { %510 = vmatpush3.bf16.msra.mxu0 %v491_v24  ;;  %v250_v32 = vpop.permute.xlu1 %249  ;;  %v238_v33 = vpop.permute.xlu0 %237  ;;  %v487_v24 = vld [vmem:[%s847_s5] ss:$0 sm:$0xff] }
  0xbc   :  { %v258_v34 = vrot.slane %v250_v32, %v736_v27  ;;  %v246_v35 = vrot.slane %v238_v33, %v736_v27  ;;  %511 = vmatprep.subr.bf16.mxu0 %v618_v11  ;;  %v343_v37 = vmul.bf16 %v327_v25, %v91_v23  ;;  %v342_v38 = vmul.bf16 %v326_v29, %v90_v26  ;;  %v540_v23 = vld [vmem:[#allocation2] sm:$0xff]  }
  0xbd   :  { %v493_v53 = vcombine.low %v356_v41, %v357_v42 }
  0xbe   :  { %v329_v43 = vmul.bf16 %v738_v28, %v258_v34  ;;  %v328_v44 = vmul.bf16 %v738_v28, %v246_v35  ;;  %v358_v54 = vadd.bf16 %v342_v38, %v74_v45  ;;  %v359_v55 = vadd.bf16 %v343_v37, %v75_v46 }
  0xbf   :  { %512 = vmatpush3.bf16.msra.mxu0 %v492_v36  ;;  %v274_v47 = vpop.permute.xlu1 %273  ;;  %v262_v48 = vpop.permute.xlu0 %261 }
  0xc0   :  { %v345_v49 = vmul.bf16 %v329_v43, %v93_v39  ;;  %v344_v50 = vmul.bf16 %v328_v44, %v92_v40  ;;  %v282_v51 = vrot.slane %v274_v47, %v736_v27  ;;  %v270_v52 = vrot.slane %v262_v48, %v736_v27  ;;  %513 = vmatprep.subr.bf16.mxu0 %v618_v11 }
  0xc1   :  { %v494_v7 = vcombine.low %v358_v54, %v359_v55 }
  0xc2   :  { %v331_v59 = vmul.bf16 %v738_v28, %v282_v51  ;;  %v330_v61 = vmul.bf16 %v738_v28, %v270_v52  ;;  %v360_v2 = vadd.bf16 %v344_v50, %v76_v56  ;;  %v361_v3 = vadd.bf16 %v345_v49, %v77_v57 }
  0xc3   :  { %514 = vmatpush3.bf16.msra.mxu0 %v493_v53  ;;  %v298_v62 = vpop.permute.xlu1 %297  ;;  %v286_v63 = vpop.permute.xlu0 %285 }
  0xc4   :  { %v306_v0 = vrot.slane %v298_v62, %v736_v27  ;;  %v294_v1 = vrot.slane %v286_v63, %v736_v27  ;;  %515 = vmatprep.subr.bf16.mxu0 %v618_v11  ;;  %v347_v4 = vmul.bf16 %v331_v59, %v95_v58  ;;  %v346_v5 = vmul.bf16 %v330_v61, %v94_v60  ;;  %v79_v27 = vld [vmem:[%s843_s1 + $0x34] sm:$0xf] }
  0xc5   :  { %v495_v13 = vcombine.low %v360_v2, %v361_v3 }
  0xc6   :  { %v333_v8 = vmul.bf16 %v738_v28, %v306_v0  ;;  %v332_v10 = vmul.bf16 %v738_v28, %v294_v1  ;;  %v362_v16 = vadd.bf16 %v346_v5, %v78_v12  ;;  %v363_v17 = vadd.bf16 %v347_v4, %v79_v27  ;;  %v80_v28 = vld [vmem:[%s843_s1 + $0x38] sm:$0xf]  ;;  %s585_s1 = scalar_lea.vmem %s475_s10, 256 }
  0xc7   :  { %516 = vmatpush3.bf16.msra.mxu0 %v494_v7  ;;  %p586_p2 = scmp.ne.s32.totalorder %s475_s10, %s585_s1  ;;  %p591_p4 = scmp.lt.s32.totalorder %s585_s1, %s585_s1 }
  0xc8   :  { %517 = vmatprep.subr.bf16.mxu0 %v618_v11  ;;  %v349_v14 = vmul.bf16 %v333_v8, %v97_v6  ;;  %v348_v15 = vmul.bf16 %v332_v10, %v96_v9  ;;  %v496_v19 = vcombine.low %v362_v16, %v363_v17 }
  0xc9   :  { %p592_p5 = por %p591_p4, %p590_p3 }
  0xca   :  { %v364_v20 = vadd.bf16 %v348_v15, %v80_v28  ;;  %v365_v21 = vadd.bf16 %v349_v14, %v81_v18 }
  0xcb   :  { %518 = vmatpush3.bf16.msra.mxu0 %v495_v13  ;;  %p593_p6 = pnand %p592_p5, %p586_p2 }
  0xcc   :  { %519 = vmatprep.subr.bf16.mxu0 %v618_v11  ;;  %v497_v22 = vcombine.low %v364_v20, %v365_v21 }
  0xcf   :  { %520 = vmatpush3.bf16.msra.mxu0 %v496_v19 }
  0xd0   :  { %521 = vmatprep.subr.bf16.mxu0 %v618_v11 }
  0xd3   :  { %522 = vmatpush3.bf16.msra.mxu0 %v497_v22 }
  0xd6   :  { %524 = vmatmul.mubr.bf16.vlgmr.msra.gmra.mrb[0].mxu0 %v540_v23 }
 0x1a9   :  { %v458_v25 = vpop.f32.mrb[0].mxu0 }
 0x1aa   :  { %v465_v26 = vadd.f32 %v487_v24, %v458_v25  ;;  %v525_v29 = vpop.f32.mrb[1].mxu0 }
 0x1ab   :  { %v461_v30 = vpop.f32.mrb[2].mxu0 }
 0x1ac   :  { %467 = vst [vmem:[#allocation7] sm:$0xff] %v465_v26  ;;  %v466_v31 = vadd.f32 %v487_v24, %v461_v30  ;;  %v526_v32 = vpop.f32.mrb[3].mxu0 }
 0x1ae   :  { %468 = vst [vmem:[#allocation7 + $0x8] sm:$0xff] %v466_v31 }
 0x1af   :  { %596 = shalt.err (!%p593_p6)
}
 0x1b0   :  { %s597_s12 = scalar_lea.hbm %s848_s6, 256 }
 0x1b1   :  { %p598_p7 = scmp.ne.s32.totalorder %s848_s6, %s597_s12  ;;  %p601_p8 = scmp.lt.u32.totalorder %s597_s12, %s848_s6 }
 0x1b3   :  { %p603_p9 = pnand %p601_p8, %p598_p7 }
 0x1b5   :  { %606 = shalt.err (!%p603_p9)
}
 0x1b6   :  { %s622_s17 = smov 128   ;;  %s623_s18 = smov 8  }
 0x1b7   :  { %480 = dma.vmem_to_hbm [thread:$0]  %s475_s10, 256, %s848_s6, [#allocation4], %s622_s17, %s622_s17, %s623_s18  }
 0x1b8   :  { %611 = dma.done.wait [#allocation4], 256  }
 0x1b9   :  { %612 = vsyncadd [#allocation4], 4294967040 }
 0x1ba   :  { %484 = vsyncpa [#allocation3], 1 }
 0x1bb   :  { %485 = vsyncpa [#allocation6], 1 }
 0x1bc   :  { %486 = vsyncpa [#allocation4], 1 }

</bundles_post_ra>
